<compile_context>
chip_gen: v6e
topology: v6e:2x2x1
jax: 0.10.0
libtpu: 0.0.40
codegen_flags: <defaults>
</compile_context>

<pallas_src>
import jax
import jax.numpy as jnp
from jax.experimental import pallas as pl
from jax.experimental.pallas import tpu as pltpu


def _broadcast_kernel(points_ref, out_ref):
    # points_ref: (1, tnc) VMEM tile of the flattened points[:n] slab
    # out_ref:    (tb, tnc) VMEM tile for the current (batch, lane) block
    out_ref[...] = jnp.broadcast_to(points_ref[...], out_ref.shape)


# Per-output-block budget: 8 MiB sits inside the recommended band for all of
# v5e (6-8 MiB), v6e (8-16 MiB) and v7x (~8-12 MiB).
_BLOCK_BUDGET_BYTES = 8 << 20
# Cap on a single lane-chunk (row slice) so the sublane-padded (1, tnc) input
# buffer and the 8-row-floor output block both stay bounded.
_ROW_CHUNK_CAP_BYTES = 512 << 10
# Force >=2 grid steps above this total output size (v7x dual-TC sharding).
_MIN_SPLIT_BYTES = 2 << 20


def _choose_tiles(batch: int, nc: int, itemsize: int):
    """Pick (tb, tnc) batch/lane tile sizes for the (batch, nc) output slab."""
    row_bytes = nc * itemsize

    # Lane (last-dim) tile: full nc when a row is small, else a multiple of 128
    # bounded by _ROW_CHUNK_CAP_BYTES.
    if row_bytes <= _ROW_CHUNK_CAP_BYTES:
        tnc = nc
    else:
        tnc = max(128, (_ROW_CHUNK_CAP_BYTES // (128 * itemsize)) * 128)

    chunk_bytes = tnc * itemsize

    # Batch (sublane) tile: biggest multiple of 8 that keeps one output block
    # inside the budget, or the full batch when it all fits.
    tb = _BLOCK_BUDGET_BYTES // max(1, chunk_bytes)
    if tb >= batch:
        tb = batch
    else:
        tb = max(8, (tb // 8) * 8)

    # Ensure >=2 grid steps for non-trivial outputs so v7x's two TensorCores
    # both get a share of the HBM write bandwidth.
    total_bytes = batch * row_bytes
    grid_b = pl.cdiv(batch, tb)
    grid_c = pl.cdiv(nc, tnc)
    if grid_b * grid_c == 1 and total_bytes > _MIN_SPLIT_BYTES:
        if batch >= 16:
            # Split the batch into >=2 tiles (multiples of 8 rows).
            tb = max(8, (pl.cdiv(batch, 2) // 8) * 8)
        elif tnc == nc and nc > 128:
            # Split the lane axis into >=2 chunks (multiples of 128 lanes).
            tnc = max(128, ((pl.cdiv(nc, 2) + 127) // 128) * 128)
        # else: tiny batch and tiny row -> accept a single step.

    return tb, tnc


def first_k_set_generator(points: jax.Array, latent: jax.Array, n: int) -> jax.Array:
    """Returns points[:n] broadcast to (batch, n, set_channels)."""
    max_n, set_channels = points.shape
    assert 0 < n <= max_n, f"n={n} out of range for max_n={max_n}"
    batch = latent.shape[0]
    nc = n * set_channels
    itemsize = points.dtype.itemsize

    # Static slice + flatten of the parameter (glue, stays in plain JAX).
    # Lane-dense (1, n*C) layout -> unmasked wide stores inside the kernel.
    points_flat = points[:n].reshape(1, nc)

    tb, tnc = _choose_tiles(batch, nc, itemsize)
    grid = (pl.cdiv(batch, tb), pl.cdiv(nc, tnc))

    # Explicit scoped-VMEM limit: double-buffered output block + double-buffered
    # (sublane-padded to 8 rows) input slab + margin. Clamped well under v7x's
    # 64 MiB physical VMEM per TensorCore.
    out_block_bytes = tb * tnc * itemsize
    in_block_bytes = 8 * tnc * itemsize
    vmem_limit = 2 * out_block_bytes + 2 * in_block_bytes + (4 << 20)
    vmem_limit = int(min(max(vmem_limit, 16 << 20), 48 << 20))

    out_flat = pl.pallas_call(
        _broadcast_kernel,
        out_shape=jax.ShapeDtypeStruct((batch, nc), points.dtype),
        grid_spec=pl.GridSpec(
            grid=grid,
            in_specs=[
                # Grid-invariant along the batch axis; chunked along lanes.
                pl.BlockSpec(
                    (1, tnc),
                    lambda b, c: (0, c),
                    memory_space=pltpu.MemorySpace.VMEM,
                ),
            ],
            out_specs=pl.BlockSpec(
                (tb, tnc),
                lambda b, c: (b, c),
                memory_space=pltpu.MemorySpace.VMEM,
            ),
        ),
        compiler_params=pltpu.CompilerParams(
            dimension_semantics=("parallel", "parallel"),
            vmem_limit_bytes=vmem_limit,
        ),
        cost_estimate=pl.CostEstimate(
            flops=0,
            transcendentals=0,
            bytes_accessed=batch * nc * itemsize + nc * itemsize,
        ),
    )(points_flat)

    # Lane-dense slab back to the module's (batch, n, set_channels) output shape.
    return out_flat.reshape(batch, n, set_channels)


if __name__ == "__main__":
    key = jax.random.PRNGKey(0)
    k_points, k_latent = jax.random.split(key)

    # Module config (small, consistent with __init__ / forward):
    set_channels = 32
    max_n = 16
    n = 8
    batch = 2
    latent_dim = 64

    # Deterministic parameter init (stand-in for nn.Parameter(torch.randn(max_n, set_channels)))
    points = jax.random.normal(k_points, (max_n, set_channels), dtype=jnp.float32)
    latent = jax.random.normal(k_latent, (batch, latent_dim), dtype=jnp.float32)

    out = first_k_set_generator(points, latent, n)
    out = jax.block_until_ready(out)

    # Reference check (pure JAX)
    ref = jnp.broadcast_to(points[:n][None], (batch, n, set_channels))
    assert out.shape == (batch, n, set_channels), out.shape
    assert out.dtype == jnp.float32, out.dtype
    assert jnp.array_equal(out, ref), "mismatch vs reference broadcast"

    print("KERNEL_OK")
</pallas_src>

<mosaic_0001>
module attributes {stable_mosaic.version = 11 : i64} {
  func.func @_broadcast_kernel(%arg0: i32, %arg1: i32, %arg2: memref<1x256xf32, #tpu.memory_space<vmem>>, %arg3: memref<2x256xf32, #tpu.memory_space<vmem>>) attributes {dimension_semantics = [#tpu.dimension_semantics<parallel>, #tpu.dimension_semantics<parallel>], iteration_bounds = array<i64: 1, 1>, scalar_prefetch = 0 : i64, scratch_operands = 0 : i64, tpu.core_type = #tpu.core_type<tc>, window_params = [{transform_indices = @transform_0, window_bounds = array<i64: 1, 256>}, {transform_indices = @transform_1, window_bounds = array<i64: 2, 256>}]} {
    %c0 = arith.constant 0 : index
    %c0_0 = arith.constant 0 : index
    %0 = vector.load %arg2[%c0, %c0_0] : memref<1x256xf32, #tpu.memory_space<vmem>>, vector<1x256xf32>
    %1 = vector.shape_cast %0 : vector<1x256xf32> to vector<1x256xf32>
    %2 = vector.broadcast %1 : vector<1x256xf32> to vector<2x256xf32>
    %c0_1 = arith.constant 0 : index
    %c0_2 = arith.constant 0 : index
    %3 = vector.load %arg3[%c0_1, %c0_2] : memref<2x256xf32, #tpu.memory_space<vmem>>, vector<2x256xf32>
    tpu.vector_store %arg3[%c0_1, %c0_2], %2 {strides = array<i32>} : memref<2x256xf32, #tpu.memory_space<vmem>>, vector<2x256xf32>,
    return
  }
  func.func @transform_0(%arg0: i32, %arg1: i32) -> (i32, i32) {
    %c0_i32 = arith.constant 0 : i32
    %c0_i32_0 = arith.constant 0 : i32
    return %c0_i32, %arg1 : i32, i32
  }
  func.func @transform_1(%arg0: i32, %arg1: i32) -> (i32, i32) {
    %c0_i32 = arith.constant 0 : i32
    return %arg0, %arg1 : i32, i32
  }
}

</mosaic_0001>

<bundles_post_ra>
// kernel: tpu_custom_call.1
= control target key start
LH: loop header
LB: loop body
LE: loop exit
PB: predicated region body
PF: predicated region fallthrough
CT: control target
= control target key end

     0   :  { %6 = vsyncpa [#allocation3], 0  ;;  %s121_s0 = inlined_call_operand.hbm [shape: f32[1,256], index: 0, kind: input, shape index: {}]   ;;  %s122_s1 = inlined_call_operand.hbm [shape: f32[2,256], index: 1, kind: output, shape index: {}]  }
   0x1   :  { %7 = vsyncpa [#allocation4], 0  ;;  %s103_s6 = smov [#allocation2]  }
   0x2   :  { %s14_s7 = sshll.u32 %s103_s6, 4  ;;  %s15_s7 = int_to_ptr.vmem [resolvable:$true] %s14_s7 }
   0x3   :  { %s67_s8 = scalar_lea.vmem %s15_s7, 32  ;;  %p72_p1 = scmp.lt.s32.totalorder %s15_s7, %s15_s7 }
   0x4   :  { %p68_p0 = scmp.ne.s32.totalorder %s15_s7, %s67_s8  ;;  %p73_p2 = scmp.lt.s32.totalorder %s67_s8, %s67_s8 }
   0x6   :  { %p74_p3 = por %p73_p2, %p72_p1 }
   0x8   :  { %p75_p4 = pnand %p74_p3, %p68_p0 }
   0xa   :  { %78 = shalt.err (!%p75_p4)
}
   0xb   :  { %17 = dma.hbm_to_vmem [thread:$0]  %s121_s0, 32, %s15_s7, [#allocation3]  }
   0xc   :  { %99 = dma.done.wait [#allocation3], 32  }
   0xd   :  { %100 = vsyncadd [#allocation3], 4294967264  ;;  %v23_v0 = vlaneseq  ;;  %v21_v4 = vld [vmem:[#allocation2] sm:$0x3]  ;;  %s104_s11 = smov [#allocation5]  }
   0xe   :  { %s47_s12 = sshll.u32 %s104_s11, 4  ;;  %s48_s12 = int_to_ptr.vmem [resolvable:$true] %s47_s12 }
   0xf   :  { %v24_v1 = vshrl.u32 %v23_v0, 7  ;;  %s79_s13 = scalar_lea.vmem %s48_s12, 64  ;;  %p84_p6 = scmp.lt.s32.totalorder %s48_s12, %s48_s12 }
  0x10   :  { %p80_p5 = scmp.ne.s32.totalorder %s48_s12, %s79_s13  ;;  %p85_p7 = scmp.lt.s32.totalorder %s79_s13, %s79_s13 }
  0x11   :  { %v25_v2 = vsub.s32 0, %v24_v1  ;;  %v29_v3 = vsub.s32 1, %v24_v1 }
  0x12   :  { %p86_p8 = por %p85_p7, %p84_p6 }
  0x13   :  { %v26_v5 = vrot.slane %v21_v4, %v25_v2  ;;  %v30_v6 = vrot.slane %v21_v4, %v29_v3 }
  0x14   :  { %p87_p9 = pnand %p86_p8, %p80_p5 }
  0x15   :  { %v31_v7 = vcombine.low %v26_v5, %v30_v6 }
  0x17   :  { %56 = vst.sshfl [vmem:[#allocation5] sm:$0x33 pattern:$0x76325410] %v31_v7 }
  0x18   :  { %90 = shalt.err (!%p87_p9)
}
  0x19   :  { %50 = dma.vmem_to_hbm [thread:$0]  %s48_s12, 64, %s122_s1, [#allocation4]  }
  0x1a   :  { %101 = dma.done.wait [#allocation4], 64  }
  0x1b   :  { %102 = vsyncadd [#allocation4], 4294967232 }
  0x1c   :  { %54 = vsyncpa [#allocation3], 1 }
  0x1d   :  { %55 = vsyncpa [#allocation4], 1 }

</bundles_post_ra>
